<compile_context>
chip_gen: v7x
topology: tpu7x:2x2x1
jax: 0.10.0
libtpu: 0.0.40
codegen_flags: <defaults>
</compile_context>

<pallas_src>
import functools

import jax
import jax.numpy as jnp
from jax.experimental import pallas as pl
from jax.experimental.pallas import tpu as pltpu


def _lstm_kernel(x_ref, wih_ref, whh_ref, b_ref, wfc_ref, bfc_ref, out_ref,
                 *, seq, batch, hidden):
    """Single invocation: whole sequence resident in VMEM.

    x_ref:   (S*B, I)  time-major flattened input (row t*B + b)
    wih_ref: (I, 4H)   W_ih^T
    whh_ref: (H, 4H)   W_hh^T
    b_ref:   (1, 4H)   b_ih + b_hh
    wfc_ref: (H, T)    W_fc^T
    bfc_ref: (1, T)    b_fc
    out_ref: (B, T)
    """
    B, H, S = batch, hidden, seq

    # Phase 1: input projection for ALL time steps in one MXU pass (+ fused bias).
    x_proj = (jnp.dot(x_ref[...], wih_ref[...], preferred_element_type=jnp.float32)
              + b_ref[...])                                   # (S*B, 4H)

    whh = whh_ref[...]                                        # (H, 4H), loaded once

    h = jnp.zeros((B, H), jnp.float32)
    c = jnp.zeros((B, H), jnp.float32)

    # Phase 2: recurrence. S is static and small -> fully unrolled at trace time;
    # h/c stay in vregs, x_proj slabs are static sublane-aligned slices.
    for t in range(S):
        gates = x_proj[t * B:(t + 1) * B, :] + jnp.dot(
            h, whh, preferred_element_type=jnp.float32)       # (B, 4H)

        sg = jax.nn.sigmoid(gates)                            # 1 EUP pass, full vreg
        tg = jnp.tanh(gates)                                  # 1 EUP pass, full vreg
        i_g = sg[:, 0 * H:1 * H]
        f_g = sg[:, 1 * H:2 * H]
        g_g = tg[:, 2 * H:3 * H]
        o_g = sg[:, 3 * H:4 * H]

        c = f_g * c + i_g * g_g
        h = o_g * jnp.tanh(c)

    # Phase 3: fc on the last hidden state.
    out_ref[...] = (jnp.dot(h, wfc_ref[...], preferred_element_type=jnp.float32)
                    + bfc_ref[...]).astype(out_ref.dtype)


def prepare_params(params):
    """One-time param prep: transpose weights and fuse biases (done once, not per call)."""
    H = params["w_hh"].shape[1]
    T = params["w_fc"].shape[0]
    return {
        "wih_t": jnp.transpose(params["w_ih"]),               # (I, 4H)
        "whh_t": jnp.transpose(params["w_hh"]),               # (H, 4H)
        "bias": (params["b_ih"] + params["b_hh"]).reshape(1, 4 * H),
        "wfc_t": jnp.transpose(params["w_fc"]),               # (H, T)
        "bfc": params["b_fc"].reshape(1, T),
    }


def lstm_model_forward(x, tparams):
    """x: (batch, seq, input_size) float32. tparams from prepare_params().
    Returns (batch, target_size)."""
    B, S, I = x.shape
    H = tparams["whh_t"].shape[0]
    T = tparams["wfc_t"].shape[1]

    # Time-major flatten: row t*B + b holds (batch b, time t). Total ~4 KB -> VMEM-resident.
    x_tm = jnp.transpose(x, (1, 0, 2)).reshape(S * B, I)

    kernel = functools.partial(_lstm_kernel, seq=S, batch=B, hidden=H)

    return pl.pallas_call(
        kernel,
        out_shape=jax.ShapeDtypeStruct((B, T), x.dtype),
        grid_spec=pltpu.PrefetchScalarGridSpec(
            num_scalar_prefetch=0,
            grid=(1,),                                        # single invocation
            in_specs=[
                pl.BlockSpec((S * B, I), lambda i: (0, 0)),   # full sequence, resident
                pl.BlockSpec((I, 4 * H), lambda i: (0, 0)),   # W_ih^T
                pl.BlockSpec((H, 4 * H), lambda i: (0, 0)),   # W_hh^T
                pl.BlockSpec((1, 4 * H), lambda i: (0, 0)),   # fused bias
                pl.BlockSpec((H, T), lambda i: (0, 0)),       # W_fc^T
                pl.BlockSpec((1, T), lambda i: (0, 0)),       # b_fc
            ],
            out_specs=pl.BlockSpec((B, T), lambda i: (0, 0)),
        ),
        compiler_params=pltpu.CompilerParams(
            dimension_semantics=("arbitrary",)),
    )(x_tm, tparams["wih_t"], tparams["whh_t"], tparams["bias"],
      tparams["wfc_t"], tparams["bfc"])


def _reference_forward(x, params):
    """Pure-JAX reference matching torch.nn.LSTM (gate order i, f, g, o) + Linear."""
    w_ih, w_hh, b_ih, b_hh, w_fc, b_fc = (
        params["w_ih"], params["w_hh"], params["b_ih"], params["b_hh"],
        params["w_fc"], params["b_fc"])
    B, S, I = x.shape
    H = w_hh.shape[1]
    h = jnp.zeros((B, H), jnp.float32)
    c = jnp.zeros((B, H), jnp.float32)
    for t in range(S):
        gates = x[:, t, :] @ w_ih.T + h @ w_hh.T + b_ih + b_hh
        i_g = jax.nn.sigmoid(gates[:, 0 * H:1 * H])
        f_g = jax.nn.sigmoid(gates[:, 1 * H:2 * H])
        g_g = jnp.tanh(gates[:, 2 * H:3 * H])
        o_g = jax.nn.sigmoid(gates[:, 3 * H:4 * H])
        c = f_g * c + i_g * g_g
        h = o_g * jnp.tanh(c)
    return h @ w_fc.T + b_fc


def init_params(key, input_size, num_units, target_size):
    """Deterministic init mimicking PyTorch's U(-1/sqrt(H), 1/sqrt(H))."""
    H = num_units
    k = 1.0 / jnp.sqrt(jnp.float32(H))
    keys = jax.random.split(key, 6)
    u = lambda kk, shape: jax.random.uniform(kk, shape, jnp.float32, -k, k)
    return {
        "w_ih": u(keys[0], (4 * H, input_size)),
        "w_hh": u(keys[1], (4 * H, H)),
        "b_ih": u(keys[2], (4 * H,)),
        "b_hh": u(keys[3], (4 * H,)),
        "w_fc": u(keys[4], (target_size, H)),
        "b_fc": u(keys[5], (target_size,)),
    }


if __name__ == "__main__":
    batch, seq, input_size, num_units, target_size = 8, 8, 16, 32, 4

    key = jax.random.PRNGKey(0)
    k_x, k_p = jax.random.split(key)
    x = jax.random.normal(k_x, (batch, seq, input_size), jnp.float32)
    params = init_params(k_p, input_size, num_units, target_size)

    tparams = jax.tree_util.tree_map(jnp.asarray, prepare_params(params))  # done once

    fwd = jax.jit(lstm_model_forward)
    out = jax.block_until_ready(fwd(x, tparams))

    ref = _reference_forward(x, params)
    assert out.shape == (batch, target_size)
    assert jnp.allclose(out, ref, atol=1e-4, rtol=1e-4), "mismatch vs reference"

    print("KERNEL_OK")
</pallas_src>

<mosaic_0001>
module attributes {stable_mosaic.version = 11 : i64} {
  func.func @_lstm_kernel(%arg0: i32, %arg1: memref<64x16xf32, #tpu.memory_space<vmem>>, %arg2: memref<16x128xf32, #tpu.memory_space<vmem>>, %arg3: memref<32x128xf32, #tpu.memory_space<vmem>>, %arg4: memref<1x128xf32, #tpu.memory_space<vmem>>, %arg5: memref<32x4xf32, #tpu.memory_space<vmem>>, %arg6: memref<1x4xf32, #tpu.memory_space<vmem>>, %arg7: memref<8x4xf32, #tpu.memory_space<vmem>>) attributes {dimension_semantics = [#tpu.dimension_semantics<arbitrary>], iteration_bounds = array<i64: 1>, scalar_prefetch = 0 : i64, scratch_operands = 0 : i64, tpu.core_type = #tpu.core_type<tc>, window_params = [{pipeline_mode = #tpu.pipeline_mode<synchronous>, transform_indices = @transform_0, window_bounds = array<i64: 64, 16>}, {pipeline_mode = #tpu.pipeline_mode<synchronous>, transform_indices = @transform_1, window_bounds = array<i64: 16, 128>}, {pipeline_mode = #tpu.pipeline_mode<synchronous>, transform_indices = @transform_2, window_bounds = array<i64: 32, 128>}, {pipeline_mode = #tpu.pipeline_mode<synchronous>, transform_indices = @transform_3, window_bounds = array<i64: 1, 128>}, {pipeline_mode = #tpu.pipeline_mode<synchronous>, transform_indices = @transform_4, window_bounds = array<i64: 32, 4>}, {pipeline_mode = #tpu.pipeline_mode<synchronous>, transform_indices = @transform_5, window_bounds = array<i64: 1, 4>}, {pipeline_mode = #tpu.pipeline_mode<synchronous>, transform_indices = @transform_6, window_bounds = array<i64: 8, 4>}]} {
    %c0 = arith.constant 0 : index
    %c0_0 = arith.constant 0 : index
    %0 = vector.load %arg1[%c0, %c0_0] : memref<64x16xf32, #tpu.memory_space<vmem>>, vector<64x16xf32>
    %c0_1 = arith.constant 0 : index
    %c0_2 = arith.constant 0 : index
    %1 = vector.load %arg2[%c0_1, %c0_2] : memref<16x128xf32, #tpu.memory_space<vmem>>, vector<16x128xf32>
    %cst = arith.constant dense<0.000000e+00> : vector<64x128xf32>
    %2 = tpu.matmul %0, %1, %cst {dimension_numbers = #tpu.dot_dimension_numbers<[1], [0], [0], [1], [0, 0, 1, 1], [], []>} : vector<64x16xf32>, vector<16x128xf32>, vector<64x128xf32> -> vector<64x128xf32>
    %c0_3 = arith.constant 0 : index
    %c0_4 = arith.constant 0 : index
    %3 = vector.load %arg4[%c0_3, %c0_4] : memref<1x128xf32, #tpu.memory_space<vmem>>, vector<1x128xf32>
    %4 = vector.broadcast %3 : vector<1x128xf32> to vector<64x128xf32>
    %5 = arith.addf %2, %4 : vector<64x128xf32>
    %c0_5 = arith.constant 0 : index
    %c0_6 = arith.constant 0 : index
    %6 = vector.load %arg3[%c0_5, %c0_6] : memref<32x128xf32, #tpu.memory_space<vmem>>, vector<32x128xf32>
    %cst_7 = arith.constant 0.000000e+00 : f32
    %7 = vector.broadcast %cst_7 : f32 to vector<8x32xf32>
    %cst_8 = arith.constant 0.000000e+00 : f32
    %8 = vector.broadcast %cst_8 : f32 to vector<8x32xf32>
    %9 = vector.extract_strided_slice %5 {offsets = [0, 0], sizes = [8, 128], strides = [1, 1]} : vector<64x128xf32> to vector<8x128xf32>
    %cst_9 = arith.constant dense<0.000000e+00> : vector<8x128xf32>
    %10 = tpu.matmul %7, %6, %cst_9 {dimension_numbers = #tpu.dot_dimension_numbers<[1], [0], [0], [1], [0, 0, 1, 1], [], []>} : vector<8x32xf32>, vector<32x128xf32>, vector<8x128xf32> -> vector<8x128xf32>
    %11 = arith.addf %9, %10 : vector<8x128xf32>
    %12 = arith.negf %11 : vector<8x128xf32>
    %13 = math.exp %12 : vector<8x128xf32>
    %cst_10 = arith.constant 1.000000e+00 : f32
    %14 = vector.broadcast %cst_10 : f32 to vector<8x128xf32>
    %15 = arith.addf %14, %13 : vector<8x128xf32>
    %16 = arith.divf %14, %15 : vector<8x128xf32>
    %17 = math.tanh %11 : vector<8x128xf32>
    %18 = vector.extract_strided_slice %16 {offsets = [0, 0], sizes = [8, 32], strides = [1, 1]} : vector<8x128xf32> to vector<8x32xf32>
    %19 = vector.extract_strided_slice %16 {offsets = [0, 32], sizes = [8, 32], strides = [1, 1]} : vector<8x128xf32> to vector<8x32xf32>
    %20 = vector.extract_strided_slice %17 {offsets = [0, 64], sizes = [8, 32], strides = [1, 1]} : vector<8x128xf32> to vector<8x32xf32>
    %21 = vector.extract_strided_slice %16 {offsets = [0, 96], sizes = [8, 32], strides = [1, 1]} : vector<8x128xf32> to vector<8x32xf32>
    %22 = arith.mulf %19, %8 : vector<8x32xf32>
    %23 = arith.mulf %18, %20 : vector<8x32xf32>
    %24 = arith.addf %22, %23 : vector<8x32xf32>
    %25 = math.tanh %24 : vector<8x32xf32>
    %26 = arith.mulf %21, %25 : vector<8x32xf32>
    %27 = vector.extract_strided_slice %5 {offsets = [8, 0], sizes = [8, 128], strides = [1, 1]} : vector<64x128xf32> to vector<8x128xf32>
    %cst_11 = arith.constant dense<0.000000e+00> : vector<8x128xf32>
    %28 = tpu.matmul %26, %6, %cst_11 {dimension_numbers = #tpu.dot_dimension_numbers<[1], [0], [0], [1], [0, 0, 1, 1], [], []>} : vector<8x32xf32>, vector<32x128xf32>, vector<8x128xf32> -> vector<8x128xf32>
    %29 = arith.addf %27, %28 : vector<8x128xf32>
    %30 = arith.negf %29 : vector<8x128xf32>
    %31 = math.exp %30 : vector<8x128xf32>
    %cst_12 = arith.constant 1.000000e+00 : f32
    %32 = vector.broadcast %cst_12 : f32 to vector<8x128xf32>
    %33 = arith.addf %32, %31 : vector<8x128xf32>
    %34 = arith.divf %32, %33 : vector<8x128xf32>
    %35 = math.tanh %29 : vector<8x128xf32>
    %36 = vector.extract_strided_slice %34 {offsets = [0, 0], sizes = [8, 32], strides = [1, 1]} : vector<8x128xf32> to vector<8x32xf32>
    %37 = vector.extract_strided_slice %34 {offsets = [0, 32], sizes = [8, 32], strides = [1, 1]} : vector<8x128xf32> to vector<8x32xf32>
    %38 = vector.extract_strided_slice %35 {offsets = [0, 64], sizes = [8, 32], strides = [1, 1]} : vector<8x128xf32> to vector<8x32xf32>
    %39 = vector.extract_strided_slice %34 {offsets = [0, 96], sizes = [8, 32], strides = [1, 1]} : vector<8x128xf32> to vector<8x32xf32>
    %40 = arith.mulf %37, %24 : vector<8x32xf32>
    %41 = arith.mulf %36, %38 : vector<8x32xf32>
    %42 = arith.addf %40, %41 : vector<8x32xf32>
    %43 = math.tanh %42 : vector<8x32xf32>
    %44 = arith.mulf %39, %43 : vector<8x32xf32>
    %45 = vector.extract_strided_slice %5 {offsets = [16, 0], sizes = [8, 128], strides = [1, 1]} : vector<64x128xf32> to vector<8x128xf32>
    %cst_13 = arith.constant dense<0.000000e+00> : vector<8x128xf32>
    %46 = tpu.matmul %44, %6, %cst_13 {dimension_numbers = #tpu.dot_dimension_numbers<[1], [0], [0], [1], [0, 0, 1, 1], [], []>} : vector<8x32xf32>, vector<32x128xf32>, vector<8x128xf32> -> vector<8x128xf32>
    %47 = arith.addf %45, %46 : vector<8x128xf32>
    %48 = arith.negf %47 : vector<8x128xf32>
    %49 = math.exp %48 : vector<8x128xf32>
    %cst_14 = arith.constant 1.000000e+00 : f32
    %50 = vector.broadcast %cst_14 : f32 to vector<8x128xf32>
    %51 = arith.addf %50, %49 : vector<8x128xf32>
    %52 = arith.divf %50, %51 : vector<8x128xf32>
    %53 = math.tanh %47 : vector<8x128xf32>
    %54 = vector.extract_strided_slice %52 {offsets = [0, 0], sizes = [8, 32], strides = [1, 1]} : vector<8x128xf32> to vector<8x32xf32>
    %55 = vector.extract_strided_slice %52 {offsets = [0, 32], sizes = [8, 32], strides = [1, 1]} : vector<8x128xf32> to vector<8x32xf32>
    %56 = vector.extract_strided_slice %53 {offsets = [0, 64], sizes = [8, 32], strides = [1, 1]} : vector<8x128xf32> to vector<8x32xf32>
    %57 = vector.extract_strided_slice %52 {offsets = [0, 96], sizes = [8, 32], strides = [1, 1]} : vector<8x128xf32> to vector<8x32xf32>
    %58 = arith.mulf %55, %42 : vector<8x32xf32>
    %59 = arith.mulf %54, %56 : vector<8x32xf32>
    %60 = arith.addf %58, %59 : vector<8x32xf32>
    %61 = math.tanh %60 : vector<8x32xf32>
    %62 = arith.mulf %57, %61 : vector<8x32xf32>
    %63 = vector.extract_strided_slice %5 {offsets = [24, 0], sizes = [8, 128], strides = [1, 1]} : vector<64x128xf32> to vector<8x128xf32>
    %cst_15 = arith.constant dense<0.000000e+00> : vector<8x128xf32>
    %64 = tpu.matmul %62, %6, %cst_15 {dimension_numbers = #tpu.dot_dimension_numbers<[1], [0], [0], [1], [0, 0, 1, 1], [], []>} : vector<8x32xf32>, vector<32x128xf32>, vector<8x128xf32> -> vector<8x128xf32>
    %65 = arith.addf %63, %64 : vector<8x128xf32>
    %66 = arith.negf %65 : vector<8x128xf32>
    %67 = math.exp %66 : vector<8x128xf32>
    %cst_16 = arith.constant 1.000000e+00 : f32
    %68 = vector.broadcast %cst_16 : f32 to vector<8x128xf32>
    %69 = arith.addf %68, %67 : vector<8x128xf32>
    %70 = arith.divf %68, %69 : vector<8x128xf32>
    %71 = math.tanh %65 : vector<8x128xf32>
    %72 = vector.extract_strided_slice %70 {offsets = [0, 0], sizes = [8, 32], strides = [1, 1]} : vector<8x128xf32> to vector<8x32xf32>
    %73 = vector.extract_strided_slice %70 {offsets = [0, 32], sizes = [8, 32], strides = [1, 1]} : vector<8x128xf32> to vector<8x32xf32>
    %74 = vector.extract_strided_slice %71 {offsets = [0, 64], sizes = [8, 32], strides = [1, 1]} : vector<8x128xf32> to vector<8x32xf32>
    %75 = vector.extract_strided_slice %70 {offsets = [0, 96], sizes = [8, 32], strides = [1, 1]} : vector<8x128xf32> to vector<8x32xf32>
    %76 = arith.mulf %73, %60 : vector<8x32xf32>
    %77 = arith.mulf %72, %74 : vector<8x32xf32>
    %78 = arith.addf %76, %77 : vector<8x32xf32>
    %79 = math.tanh %78 : vector<8x32xf32>
    %80 = arith.mulf %75, %79 : vector<8x32xf32>
    %81 = vector.extract_strided_slice %5 {offsets = [32, 0], sizes = [8, 128], strides = [1, 1]} : vector<64x128xf32> to vector<8x128xf32>
    %cst_17 = arith.constant dense<0.000000e+00> : vector<8x128xf32>
    %82 = tpu.matmul %80, %6, %cst_17 {dimension_numbers = #tpu.dot_dimension_numbers<[1], [0], [0], [1], [0, 0, 1, 1], [], []>} : vector<8x32xf32>, vector<32x128xf32>, vector<8x128xf32> -> vector<8x128xf32>
    %83 = arith.addf %81, %82 : vector<8x128xf32>
    %84 = arith.negf %83 : vector<8x128xf32>
    %85 = math.exp %84 : vector<8x128xf32>
    %cst_18 = arith.constant 1.000000e+00 : f32
    %86 = vector.broadcast %cst_18 : f32 to vector<8x128xf32>
    %87 = arith.addf %86, %85 : vector<8x128xf32>
    %88 = arith.divf %86, %87 : vector<8x128xf32>
    %89 = math.tanh %83 : vector<8x128xf32>
    %90 = vector.extract_strided_slice %88 {offsets = [0, 0], sizes = [8, 32], strides = [1, 1]} : vector<8x128xf32> to vector<8x32xf32>
    %91 = vector.extract_strided_slice %88 {offsets = [0, 32], sizes = [8, 32], strides = [1, 1]} : vector<8x128xf32> to vector<8x32xf32>
    %92 = vector.extract_strided_slice %89 {offsets = [0, 64], sizes = [8, 32], strides = [1, 1]} : vector<8x128xf32> to vector<8x32xf32>
    %93 = vector.extract_strided_slice %88 {offsets = [0, 96], sizes = [8, 32], strides = [1, 1]} : vector<8x128xf32> to vector<8x32xf32>
    %94 = arith.mulf %91, %78 : vector<8x32xf32>
    %95 = arith.mulf %90, %92 : vector<8x32xf32>
    %96 = arith.addf %94, %95 : vector<8x32xf32>
    %97 = math.tanh %96 : vector<8x32xf32>
    %98 = arith.mulf %93, %97 : vector<8x32xf32>
    %99 = vector.extract_strided_slice %5 {offsets = [40, 0], sizes = [8, 128], strides = [1, 1]} : vector<64x128xf32> to vector<8x128xf32>
    %cst_19 = arith.constant dense<0.000000e+00> : vector<8x128xf32>
    %100 = tpu.matmul %98, %6, %cst_19 {dimension_numbers = #tpu.dot_dimension_numbers<[1], [0], [0], [1], [0, 0, 1, 1], [], []>} : vector<8x32xf32>, vector<32x128xf32>, vector<8x128xf32> -> vector<8x128xf32>
    %101 = arith.addf %99, %100 : vector<8x128xf32>
    %102 = arith.negf %101 : vector<8x128xf32>
    %103 = math.exp %102 : vector<8x128xf32>
    %cst_20 = arith.constant 1.000000e+00 : f32
    %104 = vector.broadcast %cst_20 : f32 to vector<8x128xf32>
    %105 = arith.addf %104, %103 : vector<8x128xf32>
    %106 = arith.divf %104, %105 : vector<8x128xf32>
    %107 = math.tanh %101 : vector<8x128xf32>
    %108 = vector.extract_strided_slice %106 {offsets = [0, 0], sizes = [8, 32], strides = [1, 1]} : vector<8x128xf32> to vector<8x32xf32>
    %109 = vector.extract_strided_slice %106 {offsets = [0, 32], sizes = [8, 32], strides = [1, 1]} : vector<8x128xf32> to vector<8x32xf32>
    %110 = vector.extract_strided_slice %107 {offsets = [0, 64], sizes = [8, 32], strides = [1, 1]} : vector<8x128xf32> to vector<8x32xf32>
    %111 = vector.extract_strided_slice %106 {offsets = [0, 96], sizes = [8, 32], strides = [1, 1]} : vector<8x128xf32> to vector<8x32xf32>
    %112 = arith.mulf %109, %96 : vector<8x32xf32>
    %113 = arith.mulf %108, %110 : vector<8x32xf32>
    %114 = arith.addf %112, %113 : vector<8x32xf32>
    %115 = math.tanh %114 : vector<8x32xf32>
    %116 = arith.mulf %111, %115 : vector<8x32xf32>
    %117 = vector.extract_strided_slice %5 {offsets = [48, 0], sizes = [8, 128], strides = [1, 1]} : vector<64x128xf32> to vector<8x128xf32>
    %cst_21 = arith.constant dense<0.000000e+00> : vector<8x128xf32>
    %118 = tpu.matmul %116, %6, %cst_21 {dimension_numbers = #tpu.dot_dimension_numbers<[1], [0], [0], [1], [0, 0, 1, 1], [], []>} : vector<8x32xf32>, vector<32x128xf32>, vector<8x128xf32> -> vector<8x128xf32>
    %119 = arith.addf %117, %118 : vector<8x128xf32>
    %120 = arith.negf %119 : vector<8x128xf32>
    %121 = math.exp %120 : vector<8x128xf32>
    %cst_22 = arith.constant 1.000000e+00 : f32
    %122 = vector.broadcast %cst_22 : f32 to vector<8x128xf32>
    %123 = arith.addf %122, %121 : vector<8x128xf32>
    %124 = arith.divf %122, %123 : vector<8x128xf32>
    %125 = math.tanh %119 : vector<8x128xf32>
    %126 = vector.extract_strided_slice %124 {offsets = [0, 0], sizes = [8, 32], strides = [1, 1]} : vector<8x128xf32> to vector<8x32xf32>
    %127 = vector.extract_strided_slice %124 {offsets = [0, 32], sizes = [8, 32], strides = [1, 1]} : vector<8x128xf32> to vector<8x32xf32>
    %128 = vector.extract_strided_slice %125 {offsets = [0, 64], sizes = [8, 32], strides = [1, 1]} : vector<8x128xf32> to vector<8x32xf32>
    %129 = vector.extract_strided_slice %124 {offsets = [0, 96], sizes = [8, 32], strides = [1, 1]} : vector<8x128xf32> to vector<8x32xf32>
    %130 = arith.mulf %127, %114 : vector<8x32xf32>
    %131 = arith.mulf %126, %128 : vector<8x32xf32>
    %132 = arith.addf %130, %131 : vector<8x32xf32>
    %133 = math.tanh %132 : vector<8x32xf32>
    %134 = arith.mulf %129, %133 : vector<8x32xf32>
    %135 = vector.extract_strided_slice %5 {offsets = [56, 0], sizes = [8, 128], strides = [1, 1]} : vector<64x128xf32> to vector<8x128xf32>
    %cst_23 = arith.constant dense<0.000000e+00> : vector<8x128xf32>
    %136 = tpu.matmul %134, %6, %cst_23 {dimension_numbers = #tpu.dot_dimension_numbers<[1], [0], [0], [1], [0, 0, 1, 1], [], []>} : vector<8x32xf32>, vector<32x128xf32>, vector<8x128xf32> -> vector<8x128xf32>
    %137 = arith.addf %135, %136 : vector<8x128xf32>
    %138 = arith.negf %137 : vector<8x128xf32>
    %139 = math.exp %138 : vector<8x128xf32>
    %cst_24 = arith.constant 1.000000e+00 : f32
    %140 = vector.broadcast %cst_24 : f32 to vector<8x128xf32>
    %141 = arith.addf %140, %139 : vector<8x128xf32>
    %142 = arith.divf %140, %141 : vector<8x128xf32>
    %143 = math.tanh %137 : vector<8x128xf32>
    %144 = vector.extract_strided_slice %142 {offsets = [0, 0], sizes = [8, 32], strides = [1, 1]} : vector<8x128xf32> to vector<8x32xf32>
    %145 = vector.extract_strided_slice %142 {offsets = [0, 32], sizes = [8, 32], strides = [1, 1]} : vector<8x128xf32> to vector<8x32xf32>
    %146 = vector.extract_strided_slice %143 {offsets = [0, 64], sizes = [8, 32], strides = [1, 1]} : vector<8x128xf32> to vector<8x32xf32>
    %147 = vector.extract_strided_slice %142 {offsets = [0, 96], sizes = [8, 32], strides = [1, 1]} : vector<8x128xf32> to vector<8x32xf32>
    %148 = arith.mulf %145, %132 : vector<8x32xf32>
    %149 = arith.mulf %144, %146 : vector<8x32xf32>
    %150 = arith.addf %148, %149 : vector<8x32xf32>
    %151 = math.tanh %150 : vector<8x32xf32>
    %152 = arith.mulf %147, %151 : vector<8x32xf32>
    %c0_25 = arith.constant 0 : index
    %c0_26 = arith.constant 0 : index
    %153 = vector.load %arg5[%c0_25, %c0_26] : memref<32x4xf32, #tpu.memory_space<vmem>>, vector<32x4xf32>
    %cst_27 = arith.constant dense<0.000000e+00> : vector<8x4xf32>
    %154 = tpu.matmul %152, %153, %cst_27 {dimension_numbers = #tpu.dot_dimension_numbers<[1], [0], [0], [1], [0, 0, 1, 1], [], []>} : vector<8x32xf32>, vector<32x4xf32>, vector<8x4xf32> -> vector<8x4xf32>
    %c0_28 = arith.constant 0 : index
    %c0_29 = arith.constant 0 : index
    %155 = vector.load %arg6[%c0_28, %c0_29] : memref<1x4xf32, #tpu.memory_space<vmem>>, vector<1x4xf32>
    %156 = vector.broadcast %155 : vector<1x4xf32> to vector<8x4xf32>
    %157 = arith.addf %154, %156 : vector<8x4xf32>
    %c0_30 = arith.constant 0 : index
    %c0_31 = arith.constant 0 : index
    %158 = vector.load %arg7[%c0_30, %c0_31] : memref<8x4xf32, #tpu.memory_space<vmem>>, vector<8x4xf32>
    tpu.vector_store %arg7[%c0_30, %c0_31], %157 {strides = array<i32>} : memref<8x4xf32, #tpu.memory_space<vmem>>, vector<8x4xf32>,
    return
  }
  func.func @transform_0(%arg0: i32) -> (i32, i32) {
    %c0_i32 = arith.constant 0 : i32
    %c0_i32_0 = arith.constant 0 : i32
    %c0_i32_1 = arith.constant 0 : i32
    return %c0_i32, %c0_i32_0 : i32, i32
  }
  func.func @transform_1(%arg0: i32) -> (i32, i32) {
    %c0_i32 = arith.constant 0 : i32
    %c0_i32_0 = arith.constant 0 : i32
    %c0_i32_1 = arith.constant 0 : i32
    return %c0_i32, %c0_i32_0 : i32, i32
  }
  func.func @transform_2(%arg0: i32) -> (i32, i32) {
    %c0_i32 = arith.constant 0 : i32
    %c0_i32_0 = arith.constant 0 : i32
    %c0_i32_1 = arith.constant 0 : i32
    return %c0_i32, %c0_i32_0 : i32, i32
  }
  func.func @transform_3(%arg0: i32) -> (i32, i32) {
    %c0_i32 = arith.constant 0 : i32
    %c0_i32_0 = arith.constant 0 : i32
    %c0_i32_1 = arith.constant 0 : i32
    return %c0_i32, %c0_i32_0 : i32, i32
  }
  func.func @transform_4(%arg0: i32) -> (i32, i32) {
    %c0_i32 = arith.constant 0 : i32
    %c0_i32_0 = arith.constant 0 : i32
    %c0_i32_1 = arith.constant 0 : i32
    return %c0_i32, %c0_i32_0 : i32, i32
  }
  func.func @transform_5(%arg0: i32) -> (i32, i32) {
    %c0_i32 = arith.constant 0 : i32
    %c0_i32_0 = arith.constant 0 : i32
    %c0_i32_1 = arith.constant 0 : i32
    return %c0_i32, %c0_i32_0 : i32, i32
  }
  func.func @transform_6(%arg0: i32) -> (i32, i32) {
    %c0_i32 = arith.constant 0 : i32
    %c0_i32_0 = arith.constant 0 : i32
    %c0_i32_1 = arith.constant 0 : i32
    return %c0_i32, %c0_i32_0 : i32, i32
  }
}

</mosaic_0001>

<bundles_post_ra>
// kernel: lstm_model_forward.1
= control target key start
LH: loop header
LB: loop body
LE: loop exit
PB: predicated region body
PF: predicated region fallthrough
CT: control target
= control target key end

     0   :  { %vm40_vm0 = vcmask 130048   ;;  %v1388_v0 = vmov 0.0|0.0   ;;  %vm1389_vm1 = vmmov 0   ;;  %v1390_v4 = vmov 0.0   ;;  %s1391_s13 = smov 64   ;;  %s1618_s1 = inlined_call_operand.vmem [shape: f32[16,128], index: 1, kind: input, shape index: {}]   ;;  %s1619_s2 = inlined_call_operand.vmem [shape: f32[32,128], index: 2, kind: input, shape index: {}]   ;;  %s1620_s0 = inlined_call_operand.vmem [shape: f32[64,16], index: 0, kind: input, shape index: {}]   ;;  %s1621_s3 = inlined_call_operand.vmem [shape: f32[1,128], index: 3, kind: input, shape index: {}]   ;;  %s1622_s4 = inlined_call_operand.vmem [shape: f32[32,4], index: 4, kind: input, shape index: {}]   ;;  %s1623_s5 = inlined_call_operand.vmem [shape: f32[1,4], index: 5, kind: input, shape index: {}]   ;;  %s1624_s6 = inlined_call_operand.vmem [shape: f32[8,4], index: 6, kind: output, shape index: {}]  }
   0x1   :  { %1265 = vmatprep.subr.bf16.mxu1 %v1388_v0  ;;  %v31_v1 = vld [vmem:[%s1618_s1] sm:$0xff]  ;;  %v32_v2 = vld [vmem:[%s1618_s1 + $0x8] sm:$0xff]  ;;  %1170 = vmatprep.mubr.msk.f32.mxu1 %vm1389_vm1, %v1390_v4  ;;  %v172_v9 = vld [vmem:[%s1619_s2 + $0x10] sm:$0xff]  ;;  %vm174_vm2 = vcmask 261120   ;;  %vm1059_vm3 = vcmask 31744  }
   0x2   :  { %v170_v3 = vld [vmem:[%s1619_s2] sm:$0xff]  ;;  %v1261_v5 = vpack.c.bf16 %v32_v2, %v31_v1  ;;  %v171_v6 = vld [vmem:[%s1619_s2 + $0x8] sm:$0xff]  ;;  %v173_v10 = vld [vmem:[%s1619_s2 + $0x18] sm:$0xff] }
   0x3   :  { %v23_v7 = vld [vmem:[%s1620_s0] sm:$0xff]  ;;  %v1446_v8 = vpack.c.bf16 %v171_v6, %v170_v3  ;;  %v24_v11 = vld [vmem:[%s1620_s0 + $0x8] sm:$0xff]  ;;  %v1459_v12 = vpack.c.bf16 %v173_v10, %v172_v9  ;;  %v25_v48 = vld [vmem:[%s1620_s0 + $0x10] sm:$0xff] }
   0x4   :  { %1150 = vmatprep.mubr.msk.f32.mxu0 %vm40_vm0, %v23_v7  ;;  %1262 = vmatprep.subr.bf16.mxu0 %v1261_v5  ;;  %v1480_v13 = vld [vmem:[%s1621_s3] ss:$0 sm:$0xff]  ;;  %s1392_s3 = smov 32   ;;  %v26_v49 = vld [vmem:[%s1620_s0 + $0x18] sm:$0xff]  ;;  %v28_v51 = vld [vmem:[%s1620_s0 + $0x28] sm:$0xff] }
   0x5   :  { %1267 = vmatpush3.bf16.msra.mxu1 %v1446_v8  ;;  %1264 = vmatpush3.bf16.msra.mxu0 %v1261_v5  ;;  %v27_v50 = vld [vmem:[%s1620_s0 + $0x20] sm:$0xff]  ;;  %v29_v52 = vld [vmem:[%s1620_s0 + $0x30] sm:$0xff]  ;;  %v30_v53 = vld [vmem:[%s1620_s0 + $0x38] sm:$0xff] }
   0x6   :  { %1268 = vmatprep.subr.bf16.mxu1 %v1388_v0  ;;  %1277 = vmatprep.subr.bf16.mxu0 %v1388_v0 }
   0x8   :  { %1151 = vmatmul.mubr.msk.f32.vlgmr.msra.gmra.mrb[0].mxu0 %vm40_vm0, %v24_v11 }
   0x9   :  { %1270 = vmatpush3.bf16.msra.mxu1 %v1459_v12  ;;  %1279 = vmatpush3.bf16.msra.mxu0 %v1446_v8 }
   0xa   :  { %1271 = vmatprep.subr.bf16.mxu1 %v1388_v0  ;;  %1280 = vmatprep.subr.bf16.mxu0 %v1388_v0 }
   0xb   :  { %1153 = vmatprep.mubr.msk.f32.mxu0 %vm40_vm0, %v25_v48 }
   0xc   :  { %1171 = vmatmul.mubr.f32.vlgmr.msra.gmra.mrb[0].mxu1 %v1390_v4  ;;  %1154 = vmatmul.mubr.msk.f32.gmra.mrb[2].mxu0 %vm40_vm0, %v26_v49 }
   0xd   :  { %1273 = vmatpush3.bf16.msra.mxu1 %v1446_v8  ;;  %1181 = vmatprep.mubr.msk.f32.mxu1 %vm1389_vm1, %v1390_v4 }
   0xe   :  { %1274 = vmatprep.subr.bf16.mxu1 %v1388_v0  ;;  %1282 = vmatpush3.bf16.msra.mxu0 %v1459_v12 }
   0xf   :  { %1289 = vmatprep.subr.bf16.mxu0 %v1388_v0  ;;  %1156 = vmatprep.mubr.msk.f32.mxu0 %vm40_vm0, %v27_v50 }
  0x10   :  { %1157 = vmatmul.mubr.msk.f32.gmra.mrb[4].mxu0 %vm40_vm0, %v28_v51 }
  0x11   :  { %1276 = vmatpush3.bf16.msra.mxu1 %v1459_v12  ;;  %1159 = vmatprep.mubr.msk.f32.mxu0 %vm40_vm0, %v29_v52 }
  0x12   :  { %1283 = vmatprep.subr.bf16.mxu1 %v1388_v0 }
  0x14   :  { %1160 = vmatmul.mubr.msk.f32.gmra.mrb[6].mxu0 %vm40_vm0, %v30_v53 }
  0x15   :  { %1192 = vmatprep.mubr.msk.f32.mxu0 %vm1389_vm1, %v1390_v4 }
  0xdb   :  { %v1152_v14 = vpop.f32.mrb[0].mxu0 }
  0xdc   :  { %v131_v15 = vpop.f32.mrb[1].mxu0  ;;  %v137_v34 = vadd.f32 %v1152_v14, %v1480_v13 }
  0xdd   :  { %v132_v16 = vadd.f32 %v1480_v13, %v131_v15 }
  0xdf   :  { %v244_v17 = vpop.f32.mrb[0].mxu1  ;;  %v1155_v57 = vpop.f32.mrb[2].mxu0 }
  0xe0   :  { %v248_v18 = vadd.f32 %v244_v17, %v132_v16  ;;  %v1172_v19 = vpop.f32.mrb[1].mxu1  ;;  %v141_v58 = vpop.f32.mrb[3].mxu0 }
  0xe1   :  { %v142_v1 = vadd.f32 %v1480_v13, %v141_v58 }
  0xe2   :  { %1324 = vtanh.f32 %v248_v18  ;;  %v1074_v21 = vmul.f32 -1.442695, %v248_v18 }
  0xe3   :  { %v1525_v59 = vpop.f32.mrb[4].mxu0 }
  0xe4   :  { %1326 = vpow2.f32 %v1074_v21  ;;  %v1527_v60 = vpop.f32.mrb[5].mxu0 }
  0xe7   :  { %v1529_v61 = vpop.f32.mrb[6].mxu0 }
  0xe8   :  { %v1531_v62 = vpop.f32.mrb[7].mxu0 }
  0xec   :  { %v1325_v20 = vpop.eup %1324 }
  0xed   :  { %258 = vrot.lane.b32.xlu0 %v1325_v20, %s1391_s13 }
  0xee   :  { %v1327_v22 = vpop.eup %1326 }
  0xef   :  { %v252_v23 = vadd.f32 1.0, %v1327_v22 }
  0xf1   :  { %1328 = vrcp.f32 %v252_v23  ;;  %v147_v23 = vadd.f32 %v1155_v57, %v1480_v13 }
  0xfb   :  { %v1329_v24 = vpop.eup %1328 }
  0xfc   :  { %v256_v27 = vmul.f32 0.0, %v1329_v24 }
 0x15f   :  { %v259_v25 = vpop.permute.xlu0 %258 }
 0x160   :  { %v261_v26 = vmul.f32 %v1329_v24, %v259_v25 }
 0x162   :  { %263 = vrot.lane.b32.xlu0 %v261_v26, %s1392_s3 }
 0x1d4   :  { %v264_v28 = vpop.permute.xlu0 %263 }
 0x1d5   :  { %v266_v29 = vadd.f32 %v264_v28, %v256_v27 }
 0x1d7   :  { %1330 = vtanh.f32 %v266_v29 }
 0x1e1   :  { %v1331_v30 = vpop.eup %1330 }
 0x1e2   :  { %269 = vrot.lane.b32.xlu1 %v1331_v30, %s1391_s13 }
 0x254   :  { %v270_v31 = vpop.permute.xlu1 %269 }
 0x255   :  { %v272_v32 = vmul.f32 %v1329_v24, %v270_v31 }
 0x257   :  { %274 = vrot.lane.b32.xlu1 %v272_v32, %s1392_s3 }
 0x2c9   :  { %v275_v33 = vpop.permute.xlu1 %274 }
 0x2ca   :  { %1182 = vmatmul.mubr.msk.f32.vlgmr.msra.gmra.mrb[2].mxu1 %vm174_vm2, %v275_v33 }
 0x2cb   :  { %1285 = vmatpush3.bf16.msra.mxu1 %v1446_v8  ;;  %1203 = vmatprep.mubr.msk.f32.mxu1 %vm1389_vm1, %v1390_v4 }
 0x2cc   :  { %1286 = vmatprep.subr.bf16.mxu1 %v1388_v0 }
 0x2cf   :  { %1288 = vmatpush3.bf16.msra.mxu1 %v1459_v12 }
 0x2d0   :  { %1295 = vmatprep.subr.bf16.mxu1 %v1388_v0 }
 0x39d   :  { %v344_v35 = vpop.f32.mrb[2].mxu1 }
 0x39e   :  { %v348_v36 = vadd.f32 %v344_v35, %v137_v34  ;;  %v1183_v37 = vpop.f32.mrb[3].mxu1 }
 0x3a0   :  { %1332 = vtanh.f32 %v348_v36  ;;  %v1076_v39 = vmul.f32 -1.442695, %v348_v36 }
 0x3a2   :  { %1334 = vpow2.f32 %v1076_v39 }
 0x3aa   :  { %v1333_v38 = vpop.eup %1332 }
 0x3ab   :  { %358 = vrot.lane.b32.xlu0 %v1333_v38, %s1391_s13 }
 0x3ac   :  { %v1335_v40 = vpop.eup %1334 }
 0x3ad   :  { %v352_v41 = vadd.f32 1.0, %v1335_v40 }
 0x3af   :  { %1336 = vrcp.f32 %v352_v41  ;;  %v152_v41 = vadd.f32 %v1480_v13, %v1527_v60  ;;  %v157_v60 = vadd.f32 %v1525_v59, %v1480_v13 }
 0x3b9   :  { %v1337_v42 = vpop.eup %1336 }
 0x3ba   :  { %v356_v45 = vmul.f32 %v1337_v42, %v266_v29 }
 0x41d   :  { %v359_v43 = vpop.permute.xlu0 %358 }
 0x41e   :  { %v361_v44 = vmul.f32 %v1337_v42, %v359_v43 }
 0x420   :  { %363 = vrot.lane.b32.xlu1 %v361_v44, %s1392_s3 }
 0x492   :  { %v364_v46 = vpop.permute.xlu1 %363 }
 0x493   :  { %v366_v47 = vadd.f32 %v364_v46, %v356_v45 }
 0x495   :  { %1338 = vtanh.f32 %v366_v47 }
 0x49f   :  { %v1339_v54 = vpop.eup %1338 }
 0x4a0   :  { %369 = vrot.lane.b32.xlu0 %v1339_v54, %s1391_s13 }
 0x512   :  { %v370_v55 = vpop.permute.xlu0 %369 }
 0x513   :  { %v372_v56 = vmul.f32 %v1337_v42, %v370_v55 }
 0x515   :  { %374 = vrot.lane.b32.xlu1 %v372_v56, %s1392_s3 }
 0x587   :  { %v375_v63 = vpop.permute.xlu1 %374 }
 0x588   :  { %1193 = vmatmul.mubr.msk.f32.vlgmr.msra.gmra.mrb[8].mxu0 %vm174_vm2, %v375_v63 }
 0x589   :  { %1291 = vmatpush3.bf16.msra.mxu0 %v1446_v8  ;;  %1214 = vmatprep.mubr.msk.f32.mxu0 %vm1389_vm1, %v1390_v4 }
 0x58a   :  { %1292 = vmatprep.subr.bf16.mxu0 %v1388_v0 }
 0x58d   :  { %1294 = vmatpush3.bf16.msra.mxu0 %v1459_v12 }
 0x58e   :  { %1301 = vmatprep.subr.bf16.mxu0 %v1388_v0 }
 0x65b   :  { %v444_v2 = vpop.f32.mrb[8].mxu0 }
 0x65c   :  { %v448_v3 = vadd.f32 %v444_v2, %v142_v1  ;;  %v1194_v5 = vpop.f32.mrb[9].mxu0 }
 0x65e   :  { %1340 = vtanh.f32 %v448_v3  ;;  %v1078_v7 = vmul.f32 -1.442695, %v448_v3 }
 0x660   :  { %1342 = vpow2.f32 %v1078_v7 }
 0x668   :  { %v1341_v6 = vpop.eup %1340 }
 0x669   :  { %458 = vrot.lane.b32.xlu0 %v1341_v6, %s1391_s13 }
 0x66a   :  { %v1343_v9 = vpop.eup %1342 }
 0x66b   :  { %v452_v10 = vadd.f32 1.0, %v1343_v9 }
 0x66d   :  { %1344 = vrcp.f32 %v452_v10 }
 0x677   :  { %v1345_v11 = vpop.eup %1344 }
 0x678   :  { %v456_v16 = vmul.f32 %v1345_v11, %v366_v47 }
 0x6db   :  { %v459_v14 = vpop.permute.xlu0 %458 }
 0x6dc   :  { %v461_v15 = vmul.f32 %v1345_v11, %v459_v14 }
 0x6de   :  { %463 = vrot.lane.b32.xlu1 %v461_v15, %s1392_s3 }
 0x750   :  { %v464_v17 = vpop.permute.xlu1 %463 }
 0x751   :  { %v466_v18 = vadd.f32 %v464_v17, %v456_v16 }
 0x753   :  { %1346 = vtanh.f32 %v466_v18 }
 0x75d   :  { %v1347_v19 = vpop.eup %1346 }
 0x75e   :  { %469 = vrot.lane.b32.xlu0 %v1347_v19, %s1391_s13 }
 0x7d0   :  { %v470_v20 = vpop.permute.xlu0 %469 }
 0x7d1   :  { %v472_v21 = vmul.f32 %v1345_v11, %v470_v20 }
 0x7d3   :  { %474 = vrot.lane.b32.xlu1 %v472_v21, %s1392_s3 }
 0x845   :  { %v475_v22 = vpop.permute.xlu1 %474 }
 0x846   :  { %1204 = vmatmul.mubr.msk.f32.vlgmr.msra.gmra.mrb[4].mxu1 %vm174_vm2, %v475_v22 }
 0x847   :  { %1297 = vmatpush3.bf16.msra.mxu1 %v1446_v8  ;;  %1225 = vmatprep.mubr.msk.f32.mxu1 %vm1389_vm1, %v1390_v4 }
 0x848   :  { %1298 = vmatprep.subr.bf16.mxu1 %v1388_v0 }
 0x84b   :  { %1300 = vmatpush3.bf16.msra.mxu1 %v1459_v12 }
 0x84c   :  { %1307 = vmatprep.subr.bf16.mxu1 %v1388_v0 }
 0x919   :  { %v544_v24 = vpop.f32.mrb[4].mxu1 }
 0x91a   :  { %v548_v25 = vadd.f32 %v544_v24, %v147_v23  ;;  %v1205_v26 = vpop.f32.mrb[5].mxu1 }
 0x91c   :  { %1348 = vtanh.f32 %v548_v25  ;;  %v1080_v28 = vmul.f32 -1.442695, %v548_v25 }
 0x91e   :  { %1350 = vpow2.f32 %v1080_v28 }
 0x926   :  { %v1349_v27 = vpop.eup %1348 }
 0x927   :  { %558 = vrot.lane.b32.xlu0 %v1349_v27, %s1391_s13 }
 0x928   :  { %v1351_v29 = vpop.eup %1350 }
 0x929   :  { %v552_v30 = vadd.f32 1.0, %v1351_v29 }
 0x92b   :  { %1352 = vrcp.f32 %v552_v30 }
 0x935   :  { %v1353_v31 = vpop.eup %1352 }
 0x936   :  { %v556_v34 = vmul.f32 %v1353_v31, %v466_v18  ;;  %v162_v18 = vadd.f32 %v1480_v13, %v1531_v62 }
 0x999   :  { %v559_v32 = vpop.permute.xlu0 %558 }
 0x99a   :  { %v561_v33 = vmul.f32 %v1353_v31, %v559_v32 }
 0x99c   :  { %563 = vrot.lane.b32.xlu1 %v561_v33, %s1392_s3 }
 0xa0e   :  { %v564_v35 = vpop.permute.xlu1 %563 }
 0xa0f   :  { %v566_v36 = vadd.f32 %v564_v35, %v556_v34  ;;  %v167_v34 = vadd.f32 %v1529_v61, %v1480_v13  ;;  %v973_v61 = vld [vmem:[%s1622_s4] sm:$0xff] }
 0xa11   :  { %1354 = vtanh.f32 %v566_v36 }
 0xa1b   :  { %v1355_v37 = vpop.eup %1354 }
 0xa1c   :  { %569 = vrot.lane.b32.xlu0 %v1355_v37, %s1391_s13 }
 0xa8e   :  { %v570_v38 = vpop.permute.xlu0 %569 }
 0xa8f   :  { %v572_v39 = vmul.f32 %v1353_v31, %v570_v38 }
 0xa91   :  { %574 = vrot.lane.b32.xlu1 %v572_v39, %s1392_s3 }
 0xb03   :  { %v575_v40 = vpop.permute.xlu1 %574 }
 0xb04   :  { %1215 = vmatmul.mubr.msk.f32.vlgmr.msra.gmra.mrb[10].mxu0 %vm174_vm2, %v575_v40 }
 0xb05   :  { %1303 = vmatpush3.bf16.msra.mxu0 %v1446_v8  ;;  %1236 = vmatprep.mubr.msk.f32.mxu0 %vm1389_vm1, %v1390_v4 }
 0xb06   :  { %1304 = vmatprep.subr.bf16.mxu0 %v1388_v0 }
 0xb09   :  { %1306 = vmatpush3.bf16.msra.mxu0 %v1459_v12 }
 0xb0a   :  { %1313 = vmatprep.subr.bf16.mxu0 %v1388_v0 }
 0xbd7   :  { %v644_v42 = vpop.f32.mrb[10].mxu0 }
 0xbd8   :  { %v648_v43 = vadd.f32 %v644_v42, %v152_v41  ;;  %v1216_v44 = vpop.f32.mrb[11].mxu0 }
 0xbda   :  { %1356 = vtanh.f32 %v648_v43  ;;  %v1082_v46 = vmul.f32 -1.442695, %v648_v43 }
 0xbdc   :  { %1358 = vpow2.f32 %v1082_v46 }
 0xbe4   :  { %v1357_v45 = vpop.eup %1356 }
 0xbe5   :  { %658 = vrot.lane.b32.xlu0 %v1357_v45, %s1391_s13 }
 0xbe6   :  { %v1359_v47 = vpop.eup %1358 }
 0xbe7   :  { %v652_v48 = vadd.f32 1.0, %v1359_v47  ;;  %v974_v47 = vld [vmem:[%s1622_s4 + $0x8] sm:$0xff] }
 0xbe9   :  { %1360 = vrcp.f32 %v652_v48  ;;  %v975_v48 = vld [vmem:[%s1622_s4 + $0x10] sm:$0xff] }
 0xbf3   :  { %v1361_v49 = vpop.eup %1360 }
 0xbf4   :  { %v656_v52 = vmul.f32 %v1361_v49, %v566_v36 }
 0xc57   :  { %v659_v50 = vpop.permute.xlu0 %658 }
 0xc58   :  { %v661_v51 = vmul.f32 %v1361_v49, %v659_v50  ;;  %v976_v50 = vld [vmem:[%s1622_s4 + $0x18] sm:$0xff] }
 0xc5a   :  { %663 = vrot.lane.b32.xlu1 %v661_v51, %s1392_s3  ;;  %v1317_v51 = vpack.c.bf16 %v976_v50, %v975_v48 }
 0xccc   :  { %v664_v53 = vpop.permute.xlu1 %663 }
 0xccd   :  { %v666_v54 = vadd.f32 %v664_v53, %v656_v52 }
 0xccf   :  { %1362 = vtanh.f32 %v666_v54 }
 0xcd9   :  { %v1363_v55 = vpop.eup %1362 }
 0xcda   :  { %669 = vrot.lane.b32.xlu0 %v1363_v55, %s1391_s13 }
 0xd4c   :  { %v670_v56 = vpop.permute.xlu0 %669 }
 0xd4d   :  { %v672_v57 = vmul.f32 %v1361_v49, %v670_v56  ;;  %v1314_v49 = vpack.c.bf16 %v974_v47, %v973_v61  ;;  %v1089_v56 = vld [vmem:[%s1623_s5] ss:$0 sm:$0xff] }
 0xd4f   :  { %674 = vrot.lane.b32.xlu1 %v672_v57, %s1392_s3 }
 0xdc1   :  { %v675_v58 = vpop.permute.xlu1 %674 }
 0xdc2   :  { %1226 = vmatmul.mubr.msk.f32.vlgmr.msra.gmra.mrb[6].mxu1 %vm174_vm2, %v675_v58 }
 0xdc3   :  { %1309 = vmatpush3.bf16.msra.mxu1 %v1446_v8  ;;  %1247 = vmatprep.mubr.msk.f32.mxu1 %vm1389_vm1, %v1390_v4 }
 0xdc4   :  { %1310 = vmatprep.subr.bf16.mxu1 %v1388_v0 }
 0xdc7   :  { %1312 = vmatpush3.bf16.msra.mxu1 %v1459_v12 }
 0xe95   :  { %v744_v63 = vpop.f32.mrb[6].mxu1 }
 0xe96   :  { %v748_v1 = vadd.f32 %v744_v63, %v157_v60  ;;  %v1227_v2 = vpop.f32.mrb[7].mxu1 }
 0xe98   :  { %1364 = vtanh.f32 %v748_v1  ;;  %v1084_v5 = vmul.f32 -1.442695, %v748_v1 }
 0xe9a   :  { %1366 = vpow2.f32 %v1084_v5 }
 0xea2   :  { %v1365_v3 = vpop.eup %1364 }
 0xea3   :  { %758 = vrot.lane.b32.xlu0 %v1365_v3, %s1391_s13 }
 0xea4   :  { %v1367_v8 = vpop.eup %1366 }
 0xea5   :  { %v752_v6 = vadd.f32 1.0, %v1367_v8 }
 0xea7   :  { %1368 = vrcp.f32 %v752_v6 }
 0xeb1   :  { %v1369_v7 = vpop.eup %1368 }
 0xeb2   :  { %v756_v12 = vmul.f32 %v1369_v7, %v666_v54 }
 0xf15   :  { %v759_v9 = vpop.permute.xlu0 %758 }
 0xf16   :  { %v761_v10 = vmul.f32 %v1369_v7, %v759_v9 }
 0xf18   :  { %763 = vrot.lane.b32.xlu1 %v761_v10, %s1392_s3 }
 0xf8a   :  { %v764_v11 = vpop.permute.xlu1 %763 }
 0xf8b   :  { %v766_v59 = vadd.f32 %v764_v11, %v756_v12 }
 0xf8d   :  { %1370 = vtanh.f32 %v766_v59 }
 0xf97   :  { %v1371_v14 = vpop.eup %1370 }
 0xf98   :  { %769 = vrot.lane.b32.xlu0 %v1371_v14, %s1391_s13 }
0x100a   :  { %v770_v15 = vpop.permute.xlu0 %769 }
0x100b   :  { %v772_v16 = vmul.f32 %v1369_v7, %v770_v15 }
0x100d   :  { %774 = vrot.lane.b32.xlu1 %v772_v16, %s1392_s3 }
0x107f   :  { %v775_v17 = vpop.permute.xlu1 %774 }
0x1080   :  { %1237 = vmatmul.mubr.msk.f32.vlgmr.msra.gmra.mrb[12].mxu0 %vm174_vm2, %v775_v17 }
0x1081   :  { %1258 = vmatprep.mubr.msk.f32.mxu0 %vm1389_vm1, %v1390_v4  ;;  %1315 = vmatpush3.bf16.msra.mxu0 %v1314_v49 }
0x1082   :  { %1316 = vmatprep.subr.bf16.mxu0 %v1388_v0 }
0x1085   :  { %1318 = vmatpush3.bf16.msra.mxu0 %v1317_v51 }
0x1153   :  { %v844_v19 = vpop.f32.mrb[12].mxu0 }
0x1154   :  { %v848_v20 = vadd.f32 %v844_v19, %v162_v18  ;;  %v1238_v21 = vpop.f32.mrb[13].mxu0 }
0x1156   :  { %1372 = vtanh.f32 %v848_v20  ;;  %v1086_v23 = vmul.f32 -1.442695, %v848_v20 }
0x1158   :  { %1374 = vpow2.f32 %v1086_v23 }
0x1160   :  { %v1373_v22 = vpop.eup %1372 }
0x1161   :  { %858 = vrot.lane.b32.xlu0 %v1373_v22, %s1391_s13 }
0x1162   :  { %v1375_v24 = vpop.eup %1374 }
0x1163   :  { %v852_v25 = vadd.f32 1.0, %v1375_v24 }
0x1165   :  { %1376 = vrcp.f32 %v852_v25 }
0x116f   :  { %v1377_v26 = vpop.eup %1376 }
0x1170   :  { %v856_v4 = vmul.f32 %v1377_v26, %v766_v59 }
0x11d3   :  { %v859_v27 = vpop.permute.xlu0 %858 }
0x11d4   :  { %v861_v28 = vmul.f32 %v1377_v26, %v859_v27 }
0x11d6   :  { %863 = vrot.lane.b32.xlu1 %v861_v28, %s1392_s3 }
0x1248   :  { %v864_v29 = vpop.permute.xlu1 %863 }
0x1249   :  { %v866_v62 = vadd.f32 %v864_v29, %v856_v4 }
0x124b   :  { %1378 = vtanh.f32 %v866_v62 }
0x1255   :  { %v1379_v30 = vpop.eup %1378 }
0x1256   :  { %869 = vrot.lane.b32.xlu0 %v1379_v30, %s1391_s13 }
0x12c8   :  { %v870_v31 = vpop.permute.xlu0 %869 }
0x12c9   :  { %v872_v32 = vmul.f32 %v1377_v26, %v870_v31 }
0x12cb   :  { %874 = vrot.lane.b32.xlu1 %v872_v32, %s1392_s3 }
0x133d   :  { %v875_v33 = vpop.permute.xlu1 %874 }
0x133e   :  { %1248 = vmatmul.mubr.msk.f32.vlgmr.msra.gmra.mrb[8].mxu1 %vm174_vm2, %v875_v33 }
0x1411   :  { %v944_v35 = vpop.f32.mrb[8].mxu1 }
0x1412   :  { %v948_v36 = vadd.f32 %v944_v35, %v167_v34  ;;  %v1249_v37 = vpop.f32.mrb[9].mxu1 }
0x1414   :  { %1380 = vtanh.f32 %v948_v36  ;;  %v1088_v39 = vmul.f32 -1.442695, %v948_v36 }
0x1416   :  { %1382 = vpow2.f32 %v1088_v39 }
0x141e   :  { %v1381_v38 = vpop.eup %1380 }
0x141f   :  { %958 = vrot.lane.b32.xlu0 %v1381_v38, %s1391_s13 }
0x1420   :  { %v1383_v40 = vpop.eup %1382 }
0x1421   :  { %v952_v41 = vadd.f32 1.0, %v1383_v40 }
0x1423   :  { %1384 = vrcp.f32 %v952_v41 }
0x142d   :  { %v1385_v42 = vpop.eup %1384 }
0x142e   :  { %v956_v45 = vmul.f32 %v1385_v42, %v866_v62 }
0x1491   :  { %v959_v43 = vpop.permute.xlu0 %958 }
0x1492   :  { %v961_v44 = vmul.f32 %v1385_v42, %v959_v43 }
0x1494   :  { %963 = vrot.lane.b32.xlu1 %v961_v44, %s1392_s3 }
0x1506   :  { %v964_v46 = vpop.permute.xlu1 %963 }
0x1507   :  { %v966_v13 = vadd.f32 %v964_v46, %v956_v45 }
0x1509   :  { %1386 = vtanh.f32 %v966_v13 }
0x1513   :  { %v1387_v52 = vpop.eup %1386 }
0x1514   :  { %969 = vrot.lane.b32.xlu0 %v1387_v52, %s1391_s13 }
0x1586   :  { %v970_v53 = vpop.permute.xlu0 %969 }
0x1587   :  { %v972_v54 = vmul.f32 %v1385_v42, %v970_v53 }
0x1589   :  { %985 = vrot.lane.b32.xlu1 %v972_v54, %s1392_s3 }
0x15fb   :  { %v986_v55 = vpop.permute.xlu1 %985 }
0x15fc   :  { %1259 = vmatmul.mubr.msk.f32.vlgmr.msra.gmra.mrb[14].mxu0 %vm174_vm2, %v986_v55 }
0x16cf   :  { %v1055_v57 = vpop.f32.mrb[14].mxu0 }
0x16d0   :  { %v1056_v58 = vadd.f32 %v1089_v56, %v1055_v57  ;;  %v1260_v60 = vpop.f32.mrb[15].mxu0 }
0x16d2   :  { %1060 = vst.msk [vmem:[%s1624_s6] sm:$0xff] %vm1059_vm3, %v1056_v58 }

</bundles_post_ra>
